<compile_context>
chip_gen: v7x
topology: tpu7x:2x2x1
jax: 0.10.0
libtpu: 0.0.40
codegen_flags: <defaults>
</compile_context>

<pallas_src>
import jax
import jax.numpy as jnp
from jax.experimental import pallas as pl
from jax.experimental.pallas import tpu as pltpu

NEG_SLOPE = 0.01  # nn.LeakyReLU() default negative_slope


def _round_up(x, m):
    return ((x + m - 1) // m) * m


def _leaky_relu(v):
    # max(v, slope*v) == LeakyReLU for slope < 1; one VALU op instead of cmp+select.
    return jnp.maximum(v, NEG_SLOPE * v)


def dqn2_kernel(x_ref, w1_ref, b_ref, w2_ref, w3_ref, o_ref):
    # x tile: (TB, F) f32 (cast to bf16 in-kernel); weights bf16; biases f32
    # packed as one (1, 2H + n_pad) operand; output f32 (TB, out_dim).
    H = w1_ref.shape[1]
    n_pad = w3_ref.shape[1]
    out_dim = o_ref.shape[1]

    b1 = b_ref[:, 0:H]
    b2 = b_ref[:, H:2 * H]
    b3 = b_ref[:, 2 * H:2 * H + n_pad]

    x = x_ref[...].astype(jnp.bfloat16)
    h1 = jnp.dot(x, w1_ref[...], preferred_element_type=jnp.float32) + b1
    h1 = _leaky_relu(h1)
    h2 = jnp.dot(h1.astype(jnp.bfloat16), w2_ref[...],
                 preferred_element_type=jnp.float32) + b2
    h2 = _leaky_relu(h2)
    out = jnp.dot(h2.astype(jnp.bfloat16), w3_ref[...],
                  preferred_element_type=jnp.float32) + b3          # (TB, n_pad) f32
    o_ref[...] = out[:, :out_dim].astype(o_ref.dtype)               # lane-sliced store


def dqn2_forward(x, params, *, tb=None):
    """x: [B, ...] flattened to [B, F]; params: dict of w1,b1,w2,b2,w3,b3 (f32, (in,out) layout)."""
    B = x.shape[0]
    x2d = x.reshape(B, -1).astype(jnp.float32)
    F = x2d.shape[1]

    w1, b1, w2, b2, w3, b3 = (params[k] for k in ("w1", "b1", "w2", "b2", "w3", "b3"))
    H = w1.shape[1]
    out_dim = w3.shape[1]

    # Pad fc3 columns to a multiple of 128 so the last MXU matmul stays lane-dense;
    # the kernel slices the padded columns off before the HBM store.
    n_pad = _round_up(max(out_dim, 128), 128)
    w3p = jnp.pad(w3, ((0, 0), (0, n_pad - out_dim)))
    b3p = jnp.pad(b3, ((0, 0), (0, n_pad - out_dim)))

    # Single bias operand: one DMA instead of three sub-KB transfers.
    b_all = jnp.concatenate(
        [b1.astype(jnp.float32), b2.astype(jnp.float32), b3p.astype(jnp.float32)],
        axis=1)  # (1, 2H + n_pad)

    # --- Batch tile selection -------------------------------------------------
    if tb is not None:
        TB = max(16, _round_up(min(tb, _round_up(B, 16)), 16))
    elif B < 512:
        TB = _round_up(B, 16)                       # small batch: one padded tile
    else:
        # Large batch: TB multiple of 256 (fills the 256-row MXU M dim on v6e/v7x),
        # aiming for >= ~8 grid steps so v7x megacore ("parallel") has work on
        # both TensorCores, capped at 1024 to amortize per-step overhead.
        TB = min(1024, max(256, _round_up(pl.cdiv(B, 8), 256)))

    # --- VMEM guard (sized against v7x's 64 MiB physical VMEM) ----------------
    def _vmem_estimate(tile_b):
        return (2 * tile_b * F * 4                      # x tile, f32, double-buffered
                + 2 * tile_b * out_dim * 4              # out tile, f32, double-buffered
                + 2 * (F * H + H * H + H * n_pad) * 2   # weights, bf16, double-buffered
                + 2 * (2 * H + n_pad) * 4)              # biases, f32, double-buffered

    VMEM_BUDGET = 48 << 20
    while _vmem_estimate(TB) > VMEM_BUDGET and TB > 16:
        TB = max(16, _round_up(TB // 2, 16))
    # TODO(synk): for very large F the resident w1 (F x 128) alone can exceed the
    # budget; that case needs a K-axis grid over F with an f32 accumulator scratch.

    vmem_limit = None
    est = _vmem_estimate(TB) + (4 << 20)
    if est > (32 << 20):
        vmem_limit = int(min(60 << 20, est))

    Bp = _round_up(B, TB)
    x_in = x2d if Bp == B else jnp.pad(x2d, ((0, Bp - B), (0, 0)))

    # bf16 weights for the MXU; x stays f32 (cast happens in-kernel on the VPU).
    w1b = w1.astype(jnp.bfloat16)
    w2b = w2.astype(jnp.bfloat16)
    w3b = w3p.astype(jnp.bfloat16)

    grid = (Bp // TB,)

    cost = pl.CostEstimate(
        flops=2 * Bp * (F * H + H * H + H * n_pad),
        transcendentals=0,
        bytes_accessed=(4 * Bp * F                        # x (f32 read)
                        + 2 * (F * H + H * H + H * n_pad)  # weights (bf16)
                        + 4 * (2 * H + n_pad)              # biases (f32)
                        + 4 * Bp * out_dim),               # output (f32, unpadded)
    )

    out = pl.pallas_call(
        dqn2_kernel,
        out_shape=jax.ShapeDtypeStruct((Bp, out_dim), jnp.float32),
        grid=grid,
        in_specs=[
            pl.BlockSpec((TB, F), lambda i: (i, 0)),            # x: pipelined over batch
            pl.BlockSpec((F, H), lambda i: (0, 0)),             # w1: VMEM-resident
            pl.BlockSpec((1, 2 * H + n_pad), lambda i: (0, 0)),  # packed biases
            pl.BlockSpec((H, H), lambda i: (0, 0)),             # w2
            pl.BlockSpec((H, n_pad), lambda i: (0, 0)),         # w3 (128-padded cols)
        ],
        out_specs=pl.BlockSpec((TB, out_dim), lambda i: (i, 0)),
        compiler_params=pltpu.CompilerParams(
            dimension_semantics=("parallel",),
            vmem_limit_bytes=vmem_limit),
        cost_estimate=cost,
    )(x_in, w1b, b_all, w2b, w3b)

    return out if Bp == B else out[:B]


def init_params(key, in_features, out_features, hidden=128):
    """Deterministic init mirroring nn.Linear's uniform(-1/sqrt(fan_in), 1/sqrt(fan_in)).
    Weights stored as (in, out) so the kernel computes x @ W + b."""
    def linear(k, fan_in, fan_out):
        kw, kb = jax.random.split(k)
        bound = 1.0 / jnp.sqrt(fan_in)
        w = jax.random.uniform(kw, (fan_in, fan_out), jnp.float32, -bound, bound)
        b = jax.random.uniform(kb, (1, fan_out), jnp.float32, -bound, bound)
        return w, b

    k1, k2, k3 = jax.random.split(key, 3)
    w1, b1 = linear(k1, in_features, hidden)
    w2, b2 = linear(k2, hidden, hidden)
    w3, b3 = linear(k3, hidden, out_features)
    return {"w1": w1, "b1": b1, "w2": w2, "b2": b2, "w3": w3, "b3": b3}


def dqn2_reference(x, params):
    """Reference mirroring the kernel's numerics (bf16 matmul operands, f32 accumulation)."""
    B = x.shape[0]
    x2d = x.reshape(B, -1)
    xb = x2d.astype(jnp.bfloat16)
    w1b = params["w1"].astype(jnp.bfloat16)
    w2b = params["w2"].astype(jnp.bfloat16)
    w3b = params["w3"].astype(jnp.bfloat16)
    h1 = jnp.dot(xb, w1b, preferred_element_type=jnp.float32) + params["b1"]
    h1 = jnp.maximum(h1, NEG_SLOPE * h1)
    h2 = jnp.dot(h1.astype(jnp.bfloat16), w2b, preferred_element_type=jnp.float32) + params["b2"]
    h2 = jnp.maximum(h2, NEG_SLOPE * h2)
    return jnp.dot(h2.astype(jnp.bfloat16), w3b, preferred_element_type=jnp.float32) + params["b3"]


def dqn2_reference_f32(x, params):
    """Pure-f32 reference of the original PyTorch forward (sanity / drift bound)."""
    B = x.shape[0]
    x2d = x.reshape(B, -1).astype(jnp.float32)
    h1 = x2d @ params["w1"] + params["b1"]
    h1 = jnp.maximum(h1, NEG_SLOPE * h1)
    h2 = h1 @ params["w2"] + params["b2"]
    h2 = jnp.maximum(h2, NEG_SLOPE * h2)
    return h2 @ params["w3"] + params["b3"]


if __name__ == "__main__":
    key = jax.random.PRNGKey(0)
    k_x, k_x2, k_x3, k_p = jax.random.split(key, 4)

    batch, in_features, out_features = 2, 32, 8
    params = init_params(k_p, in_features, out_features, hidden=128)

    # Small inference-style batch (B=2): single padded tile.
    x = jax.random.normal(k_x, (batch, in_features), dtype=jnp.float32)
    out = dqn2_forward(x, params)
    jax.block_until_ready(out)
    assert out.shape == (batch, out_features)
    assert jnp.allclose(out, dqn2_reference(x, params), atol=1e-2, rtol=1e-2), \
        "mismatch vs bf16/f32-acc reference (small batch)"
    assert jnp.allclose(out, dqn2_reference_f32(x, params), atol=5e-2, rtol=5e-2), \
        "drift vs pure-f32 reference too large (small batch)"

    # Multi-tile path: non-divisible batch with a small explicit tile to exercise
    # the grid, padding, and row slicing.
    batch2 = 48
    x2 = jax.random.normal(k_x2, (batch2, in_features), dtype=jnp.float32)
    out2 = dqn2_forward(x2, params, tb=32)  # -> grid of 2 batch tiles
    jax.block_until_ready(out2)
    assert out2.shape == (batch2, out_features)
    assert jnp.allclose(out2, dqn2_reference(x2, params), atol=1e-2, rtol=1e-2), \
        "mismatch vs bf16/f32-acc reference (multi-tile batch)"

    # Large-batch heuristic path (TB multiple of 256, multi-step parallel grid).
    batch3 = 520
    x3 = jax.random.normal(k_x3, (batch3, in_features), dtype=jnp.float32)
    out3 = dqn2_forward(x3, params)
    jax.block_until_ready(out3)
    assert out3.shape == (batch3, out_features)
    assert jnp.allclose(out3, dqn2_reference(x3, params), atol=1e-2, rtol=1e-2), \
        "mismatch vs bf16/f32-acc reference (large batch)"

    print("KERNEL_OK")
</pallas_src>

<mosaic_0001>
module attributes {stable_mosaic.version = 11 : i64} {
  func.func @dqn2_kernel(%arg0: i32, %arg1: memref<16x32xf32, #tpu.memory_space<vmem>>, %arg2: memref<32x128xbf16, #tpu.memory_space<vmem>>, %arg3: memref<1x384xf32, #tpu.memory_space<vmem>>, %arg4: memref<128x128xbf16, #tpu.memory_space<vmem>>, %arg5: memref<128x128xbf16, #tpu.memory_space<vmem>>, %arg6: memref<16x8xf32, #tpu.memory_space<vmem>>) attributes {dimension_semantics = [#tpu.dimension_semantics<parallel>], iteration_bounds = array<i64: 1>, scalar_prefetch = 0 : i64, scratch_operands = 0 : i64, tpu.core_type = #tpu.core_type<tc>, window_params = [{transform_indices = @transform_0, window_bounds = array<i64: 16, 32>}, {pipeline_mode = #tpu.pipeline_mode<synchronous>, transform_indices = @transform_1, window_bounds = array<i64: 32, 128>}, {pipeline_mode = #tpu.pipeline_mode<synchronous>, transform_indices = @transform_2, window_bounds = array<i64: 1, 384>}, {pipeline_mode = #tpu.pipeline_mode<synchronous>, transform_indices = @transform_3, window_bounds = array<i64: 128, 128>}, {pipeline_mode = #tpu.pipeline_mode<synchronous>, transform_indices = @transform_4, window_bounds = array<i64: 128, 128>}, {transform_indices = @transform_5, window_bounds = array<i64: 16, 8>}]} {
    %c0 = arith.constant 0 : index
    %c0_0 = arith.constant 0 : index
    %0 = vector.load %arg3[%c0, %c0_0] : memref<1x384xf32, #tpu.memory_space<vmem>>, vector<1x128xf32>
    %c0_1 = arith.constant 0 : index
    %c128 = arith.constant 128 : index
    %1 = vector.load %arg3[%c0_1, %c128] : memref<1x384xf32, #tpu.memory_space<vmem>>, vector<1x128xf32>
    %c0_2 = arith.constant 0 : index
    %c256 = arith.constant 256 : index
    %2 = vector.load %arg3[%c0_2, %c256] : memref<1x384xf32, #tpu.memory_space<vmem>>, vector<1x128xf32>
    %c0_3 = arith.constant 0 : index
    %c0_4 = arith.constant 0 : index
    %3 = vector.load %arg1[%c0_3, %c0_4] : memref<16x32xf32, #tpu.memory_space<vmem>>, vector<16x32xf32>
    %4 = arith.truncf %3 : vector<16x32xf32> to vector<16x32xbf16>
    %c0_5 = arith.constant 0 : index
    %c0_6 = arith.constant 0 : index
    %5 = vector.load %arg2[%c0_5, %c0_6] : memref<32x128xbf16, #tpu.memory_space<vmem>>, vector<32x128xbf16>
    %cst = arith.constant dense<0.000000e+00> : vector<16x128xf32>
    %6 = tpu.matmul %4, %5, %cst {dimension_numbers = #tpu.dot_dimension_numbers<[1], [0], [0], [1], [0, 0, 1, 1], [], []>} : vector<16x32xbf16>, vector<32x128xbf16>, vector<16x128xf32> -> vector<16x128xf32>
    %7 = vector.broadcast %0 : vector<1x128xf32> to vector<16x128xf32>
    %8 = arith.addf %6, %7 : vector<16x128xf32>
    %cst_7 = arith.constant 0.00999999977 : f32
    %9 = vector.broadcast %cst_7 : f32 to vector<16x128xf32>
    %10 = arith.mulf %9, %8 : vector<16x128xf32>
    %11 = arith.maximumf %8, %10 : vector<16x128xf32>
    %12 = arith.truncf %11 : vector<16x128xf32> to vector<16x128xbf16>
    %c0_8 = arith.constant 0 : index
    %c0_9 = arith.constant 0 : index
    %13 = vector.load %arg4[%c0_8, %c0_9] : memref<128x128xbf16, #tpu.memory_space<vmem>>, vector<128x128xbf16>
    %cst_10 = arith.constant dense<0.000000e+00> : vector<16x128xf32>
    %14 = tpu.matmul %12, %13, %cst_10 {dimension_numbers = #tpu.dot_dimension_numbers<[1], [0], [0], [1], [0, 0, 1, 1], [], []>} : vector<16x128xbf16>, vector<128x128xbf16>, vector<16x128xf32> -> vector<16x128xf32>
    %15 = vector.broadcast %1 : vector<1x128xf32> to vector<16x128xf32>
    %16 = arith.addf %14, %15 : vector<16x128xf32>
    %cst_11 = arith.constant 0.00999999977 : f32
    %17 = vector.broadcast %cst_11 : f32 to vector<16x128xf32>
    %18 = arith.mulf %17, %16 : vector<16x128xf32>
    %19 = arith.maximumf %16, %18 : vector<16x128xf32>
    %20 = arith.truncf %19 : vector<16x128xf32> to vector<16x128xbf16>
    %c0_12 = arith.constant 0 : index
    %c0_13 = arith.constant 0 : index
    %21 = vector.load %arg5[%c0_12, %c0_13] : memref<128x128xbf16, #tpu.memory_space<vmem>>, vector<128x128xbf16>
    %cst_14 = arith.constant dense<0.000000e+00> : vector<16x128xf32>
    %22 = tpu.matmul %20, %21, %cst_14 {dimension_numbers = #tpu.dot_dimension_numbers<[1], [0], [0], [1], [0, 0, 1, 1], [], []>} : vector<16x128xbf16>, vector<128x128xbf16>, vector<16x128xf32> -> vector<16x128xf32>
    %23 = vector.broadcast %2 : vector<1x128xf32> to vector<16x128xf32>
    %24 = arith.addf %22, %23 : vector<16x128xf32>
    %25 = vector.extract_strided_slice %24 {offsets = [0, 0], sizes = [16, 8], strides = [1, 1]} : vector<16x128xf32> to vector<16x8xf32>
    %c0_15 = arith.constant 0 : index
    %c0_16 = arith.constant 0 : index
    %26 = vector.load %arg6[%c0_15, %c0_16] : memref<16x8xf32, #tpu.memory_space<vmem>>, vector<16x8xf32>
    tpu.vector_store %arg6[%c0_15, %c0_16], %25 {strides = array<i32>} : memref<16x8xf32, #tpu.memory_space<vmem>>, vector<16x8xf32>,
    return
  }
  func.func @transform_0(%arg0: i32) -> (i32, i32) {
    %c0_i32 = arith.constant 0 : i32
    %c0_i32_0 = arith.constant 0 : i32
    return %arg0, %c0_i32 : i32, i32
  }
  func.func @transform_1(%arg0: i32) -> (i32, i32) {
    %c0_i32 = arith.constant 0 : i32
    %c0_i32_0 = arith.constant 0 : i32
    %c0_i32_1 = arith.constant 0 : i32
    return %c0_i32, %c0_i32_0 : i32, i32
  }
  func.func @transform_2(%arg0: i32) -> (i32, i32) {
    %c0_i32 = arith.constant 0 : i32
    %c0_i32_0 = arith.constant 0 : i32
    %c0_i32_1 = arith.constant 0 : i32
    return %c0_i32, %c0_i32_0 : i32, i32
  }
  func.func @transform_3(%arg0: i32) -> (i32, i32) {
    %c0_i32 = arith.constant 0 : i32
    %c0_i32_0 = arith.constant 0 : i32
    %c0_i32_1 = arith.constant 0 : i32
    return %c0_i32, %c0_i32_0 : i32, i32
  }
  func.func @transform_4(%arg0: i32) -> (i32, i32) {
    %c0_i32 = arith.constant 0 : i32
    %c0_i32_0 = arith.constant 0 : i32
    %c0_i32_1 = arith.constant 0 : i32
    return %c0_i32, %c0_i32_0 : i32, i32
  }
  func.func @transform_5(%arg0: i32) -> (i32, i32) {
    %c0_i32 = arith.constant 0 : i32
    %c0_i32_0 = arith.constant 0 : i32
    return %arg0, %c0_i32 : i32, i32
  }
}

</mosaic_0001>

<bundles_post_ra>
// kernel: tpu_custom_call.1
= control target key start
LH: loop header
LB: loop body
LE: loop exit
PB: predicated region body
PF: predicated region fallthrough
CT: control target
= control target key end

     0   :  { %10 = vsyncpa [#allocation3], 0  ;;  %s747_s0 = inlined_call_operand.hbm [shape: f32[16,32], index: 0, kind: input, shape index: {}]   ;;  %s748_s1 = inlined_call_operand.hbm [shape: bf16[32,128], index: 1, kind: input, shape index: {}]   ;;  %s749_s2 = inlined_call_operand.vmem [shape: f32[1,384], index: 2, kind: input, shape index: {}]   ;;  %s750_s3 = inlined_call_operand.hbm [shape: bf16[128,128], index: 3, kind: input, shape index: {}]   ;;  %s751_s4 = inlined_call_operand.hbm [shape: bf16[128,128], index: 4, kind: input, shape index: {}]   ;;  %s752_s5 = inlined_call_operand.vmem [shape: f32[16,8], index: 5, kind: output, shape index: {}]  }
   0x1   :  { %11 = vsyncpa [#allocation5], 0 }
   0x2   :  { %12 = vsyncpa [#allocation8], 0  ;;  %s604_s18 = smov [#allocation4]   ;;  %s510_s22 = scalar_lea.hbm %s748_s1, 256 }
   0x3   :  { %s30_s19 = sshll.u32 %s604_s18, 4  ;;  %p511_p0 = scmp.ne.s32.totalorder %s748_s1, %s510_s22  ;;  %s31_s19 = int_to_ptr.vmem [resolvable:$true] %s30_s19 }
   0x4   :  { %p514_p1 = scmp.lt.u32.totalorder %s510_s22, %s748_s1 }
   0x6   :  { %p516_p2 = pnand %p514_p1, %p511_p0 }
   0x8   :  { %519 = shalt.err (!%p516_p2)
}
   0x9   :  { %s520_s27 = scalar_lea.vmem %s31_s19, 256  ;;  %p525_p4 = scmp.lt.s32.totalorder %s31_s19, %s31_s19 }
   0xa   :  { %p521_p3 = scmp.ne.s32.totalorder %s31_s19, %s520_s27  ;;  %p526_p5 = scmp.lt.s32.totalorder %s520_s27, %s520_s27 }
   0xc   :  { %p527_p6 = por %p526_p5, %p525_p4 }
   0xe   :  { %p528_p7 = pnand %p527_p6, %p521_p3 }
  0x10   :  { %531 = shalt.err (!%p528_p7)
}
  0x11   :  { %s605_s28 = smov 64   ;;  %s606_s29 = smov 4  }
  0x12   :  { %36 = dma.hbm_to_vmem [thread:$0]  %s748_s1, 256, %s31_s19, [#allocation5], %s605_s28, %s605_s28, %s606_s29  }
  0x13   :  { %s607_s7 = smov [#allocation2]   ;;  %s532_s11 = scalar_lea.hbm %s747_s0, 256 }
  0x14   :  { %s18_s8 = sshll.u32 %s607_s7, 4  ;;  %p533_p8 = scmp.ne.s32.totalorder %s747_s0, %s532_s11  ;;  %s19_s8 = int_to_ptr.vmem [resolvable:$true] %s18_s8 }
  0x15   :  { %p536_p9 = scmp.lt.u32.totalorder %s532_s11, %s747_s0 }
  0x17   :  { %p538_p10 = pnand %p536_p9, %p533_p8 }
  0x19   :  { %541 = shalt.err (!%p538_p10)
}
  0x1a   :  { %s542_s16 = scalar_lea.vmem %s19_s8, 256  ;;  %p547_p12 = scmp.lt.s32.totalorder %s19_s8, %s19_s8 }
  0x1b   :  { %p543_p11 = scmp.ne.s32.totalorder %s19_s8, %s542_s16  ;;  %p548_p13 = scmp.lt.s32.totalorder %s542_s16, %s542_s16 }
  0x1d   :  { %p549_p0 = por %p548_p13, %p547_p12 }
  0x1f   :  { %p550_p1 = pnand %p549_p0, %p543_p11 }
  0x21   :  { %553 = shalt.err (!%p550_p1)
}
  0x22   :  { %s608_s1 = smov 128   ;;  %s609_s17 = smov 8  }
  0x23   :  { %24 = dma.hbm_to_vmem [thread:$0]  %s747_s0, 256, %s19_s8, [#allocation3], %s608_s1, %s608_s1, %s609_s17  }
  0x24   :  { %s610_s20 = smov [#allocation6]   ;;  %s611_s22 = smov [#allocation7]  }
  0x25   :  { %s44_s21 = sshll.u32 %s610_s20, 4  ;;  %s56_s23 = sshll.u32 %s611_s22, 4  ;;  %s45_s21 = int_to_ptr.vmem [resolvable:$true] %s44_s21  ;;  %s671_s23 = int_to_ptr.vmem [resolvable:$true] %s56_s23 }
  0x26   :  { %s554_s26 = scalar_lea.hbm %s750_s3, 1024 }
  0x27   :  { %p555_p2 = scmp.ne.s32.totalorder %s750_s3, %s554_s26  ;;  %p558_p3 = scmp.lt.u32.totalorder %s554_s26, %s750_s3 }
  0x29   :  { %p560_p4 = pnand %p558_p3, %p555_p2 }
  0x2b   :  { %563 = shalt.err (!%p560_p4)
}
  0x2c   :  { %s564_s0 = scalar_lea.vmem %s45_s21, 1024  ;;  %p569_p6 = scmp.lt.s32.totalorder %s45_s21, %s45_s21 }
  0x2d   :  { %p565_p5 = scmp.ne.s32.totalorder %s45_s21, %s564_s0  ;;  %p570_p7 = scmp.lt.s32.totalorder %s564_s0, %s564_s0 }
  0x2f   :  { %p571_p8 = por %p570_p7, %p569_p6 }
  0x31   :  { %p572_p9 = pnand %p571_p8, %p565_p5 }
  0x33   :  { %575 = shalt.err (!%p572_p9)
}
  0x34   :  { %50 = dma.hbm_to_vmem [thread:$0]  %s750_s3, 1024, %s45_s21, [#allocation5], %s605_s28, %s605_s28, %s606_s29  }
  0x35   :  { %s576_s12 = scalar_lea.hbm %s751_s4, 1024 }
  0x36   :  { %p577_p10 = scmp.ne.s32.totalorder %s751_s4, %s576_s12  ;;  %p580_p11 = scmp.lt.u32.totalorder %s576_s12, %s751_s4 }
  0x38   :  { %p582_p12 = pnand %p580_p11, %p577_p10 }
  0x3a   :  { %585 = shalt.err (!%p582_p12)
}
  0x3b   :  { %s586_s1 = scalar_lea.vmem %s671_s23, 1024  ;;  %p591_p0 = scmp.lt.s32.totalorder %s671_s23, %s671_s23 }
  0x3c   :  { %p587_p13 = scmp.ne.s32.totalorder %s671_s23, %s586_s1  ;;  %p592_p1 = scmp.lt.s32.totalorder %s586_s1, %s586_s1 }
  0x3e   :  { %p593_p2 = por %p592_p1, %p591_p0 }
  0x40   :  { %p594_p3 = pnand %p593_p2, %p587_p13 }
  0x42   :  { %597 = shalt.err (!%p594_p3)
}
  0x43   :  { %62 = dma.hbm_to_vmem [thread:$0]  %s751_s4, 1024, %s671_s23, [#allocation8], %s605_s28, %s605_s28, %s606_s29  }
  0x44   :  { %598 = dma.done.wait [#allocation3], 256  }
  0x45   :  { %599 = vsyncadd [#allocation3], 4294967040 }
  0x46   :  { %600 = dma.done.wait [#allocation5], 1280  }
  0x47   :  { %601 = vsyncadd [#allocation5], 4294966016 }
  0x48   :  { %602 = dma.done.wait [#allocation8], 1024  }
  0x49   :  { %603 = vsyncadd [#allocation8], 4294966272  ;;  %v612_v0 = vmov 0.0   ;;  %vm613_vm0 = vmmov 0   ;;  %v492_v1 = vld [vmem:[#allocation4] sm:$0xff]   ;;  %v493_v2 = vld [vmem:[#allocation4 + $0x8] sm:$0xff]  }
  0x4a   :  { %434 = vmatprep.subr.bf16.mxu0 %v612_v0  ;;  %438 = vmatprep.mubr.msk.bf16.mxu0 %vm613_vm0, %v612_v0  ;;  %v79_v3 = vld [vmem:[#allocation2] sm:$0xff]  ;;  %v80_v4 = vld [vmem:[#allocation2 + $0x8] sm:$0xff]  ;;  %vm104_vm1 = vcmask 261120   ;;  %v496_v8 = vld [vmem:[#allocation6 + $0x10] sm:$0xff]   ;;  %vm381_vm2 = vcmask 64512  }
  0x4b   :  { %442 = vmatprep.subr.bf16.mxu1 %v612_v0  ;;  %458 = vmatprep.mubr.msk.bf16.mxu1 %vm613_vm0, %v612_v0  ;;  %v494_v5 = vld [vmem:[#allocation6] sm:$0xff]   ;;  %v81_v6 = vpack.c.bf16 %v80_v4, %v79_v3  ;;  %v495_v7 = vld [vmem:[#allocation6 + $0x8] sm:$0xff]   ;;  %v497_v9 = vld [vmem:[#allocation6 + $0x18] sm:$0xff]  }
  0x4c   :  { %435 = vmatpush3.bf16.msra.mxu0 %v492_v1  ;;  %443 = vmatpush3.bf16.msra.mxu1 %v494_v5  ;;  %v498_v10 = vld [vmem:[#allocation6 + $0x20] sm:$0xff]   ;;  %v499_v11 = vld [vmem:[#allocation6 + $0x28] sm:$0xff]   ;;  %v500_v12 = vld [vmem:[#allocation6 + $0x30] sm:$0xff]  }
  0x4d   :  { %436 = vmatprep.subr.bf16.mxu0 %v612_v0  ;;  %444 = vmatprep.subr.bf16.mxu1 %v612_v0  ;;  %v501_v13 = vld [vmem:[#allocation6 + $0x38] sm:$0xff]   ;;  %v502_v14 = vld [vmem:[#allocation7] sm:$0xff]   ;;  %v503_v15 = vld [vmem:[#allocation7 + $0x8] sm:$0xff]  }
  0x4e   :  { %v504_v16 = vld [vmem:[#allocation7 + $0x10] sm:$0xff]   ;;  %v505_v17 = vld [vmem:[#allocation7 + $0x18] sm:$0xff]   ;;  %v506_v18 = vld [vmem:[#allocation7 + $0x20] sm:$0xff]  }
  0x4f   :  { %v391_v19 = vld [vmem:[%s749_s2] ss:$0 sm:$0xff]  ;;  %v507_v31 = vld [vmem:[#allocation7 + $0x28] sm:$0xff]   ;;  %v508_v32 = vld [vmem:[#allocation7 + $0x30] sm:$0xff]  }
  0x50   :  { %437 = vmatpush3.bf16.msra.mxu0 %v493_v2  ;;  %445 = vmatpush3.bf16.msra.mxu1 %v495_v7  ;;  %v509_v33 = vld [vmem:[#allocation7 + $0x38] sm:$0xff]   ;;  %v395_v34 = vld [vmem:[%s749_s2 + $0x1] ss:$0 sm:$0xff]  ;;  %v404_v46 = vld [vmem:[%s749_s2 + $0x2] ss:$0 sm:$0xff] }
  0x51   :  { %462 = vmatprep.subr.bf16.mxu0 %v612_v0  ;;  %446 = vmatprep.subr.bf16.mxu1 %v612_v0 }
  0x53   :  { %439 = vmatmul.mubr.msk.bf16.vlgmr.msra.gmra.mrb[0].mxu0 %vm104_vm1, %v81_v6 }
  0x54   :  { %478 = vmatprep.mubr.msk.bf16.mxu0 %vm613_vm0, %v612_v0  ;;  %447 = vmatpush3.bf16.msra.mxu1 %v496_v8 }
  0x55   :  { %448 = vmatprep.subr.bf16.mxu1 %v612_v0  ;;  %463 = vmatpush3.bf16.msra.mxu0 %v502_v14 }
  0x56   :  { %464 = vmatprep.subr.bf16.mxu0 %v612_v0 }
  0x58   :  { %449 = vmatpush3.bf16.msra.mxu1 %v497_v9 }
  0x59   :  { %450 = vmatprep.subr.bf16.mxu1 %v612_v0  ;;  %465 = vmatpush3.bf16.msra.mxu0 %v503_v15 }
  0x5a   :  { %466 = vmatprep.subr.bf16.mxu0 %v612_v0 }
  0x5c   :  { %451 = vmatpush3.bf16.msra.mxu1 %v498_v10 }
  0x5d   :  { %452 = vmatprep.subr.bf16.mxu1 %v612_v0  ;;  %467 = vmatpush3.bf16.msra.mxu0 %v504_v16 }
  0x5e   :  { %468 = vmatprep.subr.bf16.mxu0 %v612_v0 }
  0x60   :  { %453 = vmatpush3.bf16.msra.mxu1 %v499_v11 }
  0x61   :  { %454 = vmatprep.subr.bf16.mxu1 %v612_v0  ;;  %469 = vmatpush3.bf16.msra.mxu0 %v505_v17 }
  0x62   :  { %470 = vmatprep.subr.bf16.mxu0 %v612_v0 }
  0x64   :  { %455 = vmatpush3.bf16.msra.mxu1 %v500_v12 }
  0x65   :  { %456 = vmatprep.subr.bf16.mxu1 %v612_v0  ;;  %471 = vmatpush3.bf16.msra.mxu0 %v506_v18 }
  0x66   :  { %472 = vmatprep.subr.bf16.mxu0 %v612_v0 }
  0x68   :  { %457 = vmatpush3.bf16.msra.mxu1 %v501_v13 }
  0x69   :  { %473 = vmatpush3.bf16.msra.mxu0 %v507_v31 }
  0x6a   :  { %474 = vmatprep.subr.bf16.mxu0 %v612_v0 }
  0x6d   :  { %475 = vmatpush3.bf16.msra.mxu0 %v508_v32 }
  0x6e   :  { %476 = vmatprep.subr.bf16.mxu0 %v612_v0 }
  0x71   :  { %477 = vmatpush3.bf16.msra.mxu0 %v509_v33 }
 0x126   :  { %v142_v20 = vpop.f32.mrb[0].mxu0 }
 0x127   :  { %v143_v21 = vadd.f32 %v391_v19, %v142_v20  ;;  %v440_v22 = vpop.f32.mrb[1].mxu0 }
 0x128   :  { %v145_v23 = vpop.f32.mrb[2].mxu0 }
 0x129   :  { %v149_v24 = vmul.f32 0.01, %v143_v21  ;;  %v146_v25 = vadd.f32 %v391_v19, %v145_v23  ;;  %v441_v26 = vpop.f32.mrb[3].mxu0 }
 0x12b   :  { %v150_v27 = vmul.f32 0.01, %v146_v25  ;;  %v151_v28 = vmax.f32 %v143_v21, %v149_v24 }
 0x12d   :  { %v152_v29 = vmax.f32 %v146_v25, %v150_v27 }
 0x12f   :  { %v153_v30 = vpack.c.bf16 %v152_v29, %v151_v28 }
 0x131   :  { %459 = vmatmul.mubr.bf16.vlgmr.msra.gmra.mrb[0].mxu1 %v153_v30 }
 0x204   :  { %v258_v35 = vpop.f32.mrb[0].mxu1 }
 0x205   :  { %v259_v36 = vadd.f32 %v395_v34, %v258_v35  ;;  %v460_v37 = vpop.f32.mrb[1].mxu1 }
 0x206   :  { %v261_v38 = vpop.f32.mrb[2].mxu1 }
 0x207   :  { %v265_v39 = vmul.f32 0.01, %v259_v36  ;;  %v262_v40 = vadd.f32 %v395_v34, %v261_v38  ;;  %v461_v41 = vpop.f32.mrb[3].mxu1 }
 0x209   :  { %v266_v42 = vmul.f32 0.01, %v262_v40  ;;  %v267_v43 = vmax.f32 %v259_v36, %v265_v39 }
 0x20b   :  { %v268_v44 = vmax.f32 %v262_v40, %v266_v42 }
 0x20d   :  { %v269_v45 = vpack.c.bf16 %v268_v44, %v267_v43 }
 0x20f   :  { %479 = vmatmul.mubr.bf16.vlgmr.msra.gmra.mrb[4].mxu0 %v269_v45 }
 0x2e2   :  { %v374_v47 = vpop.f32.mrb[4].mxu0 }
 0x2e3   :  { %v375_v48 = vadd.f32 %v404_v46, %v374_v47  ;;  %v480_v49 = vpop.f32.mrb[5].mxu0 }
 0x2e4   :  { %v377_v50 = vpop.f32.mrb[6].mxu0 }
 0x2e5   :  { %382 = vst.msk [vmem:[%s752_s5] sm:$0xff] %vm381_vm2, %v375_v48  ;;  %v378_v51 = vadd.f32 %v404_v46, %v377_v50  ;;  %v481_v52 = vpop.f32.mrb[7].mxu0 }
 0x2e7   :  { %383 = vst.msk [vmem:[%s752_s5 + $0x8] sm:$0xff] %vm381_vm2, %v378_v51 }
 0x2e8   :  { %388 = vsyncpa [#allocation3], 1 }
 0x2e9   :  { %389 = vsyncpa [#allocation5], 1 }
 0x2ea   :  { %390 = vsyncpa [#allocation8], 1 }

</bundles_post_ra>
